<compile_context>
chip_gen: v7x
topology: tpu7x:2x2x1
jax: 0.10.0
libtpu: 0.0.40
codegen_flags: <defaults>
</compile_context>

<pallas_src>
from functools import lru_cache, reduce
from operator import mul

import jax
import jax.numpy as jnp
from jax.experimental import pallas as pl
from jax.experimental.pallas import tpu as pltpu


# ----------------------------------------------------------------------------
# Device-dependent tiling / VMEM budget.
# ----------------------------------------------------------------------------
@lru_cache(maxsize=None)
def _vmem_capacity_bytes():
    try:
        info = pltpu.get_tpu_info()
        cap = getattr(info, "vmem_capacity_bytes", None)
        if cap:
            return int(cap)
    except Exception:
        pass
    return 64 << 20          # conservative default (v7x per-core VMEM)


def _vmem_limit_bytes():
    # Raise the scoped-VMEM limit (v5e default is only 16 MiB of 128 physical)
    # but keep headroom under the physical capacity (matters on 64-MiB v7x).
    return int(min(96 << 20, int(_vmem_capacity_bytes() * 0.8)))


def _default_tile_m():
    # 1024-row tiles on 128-MiB VMEM parts (v5e/v6e), 512 on 64-MiB v7x.
    return 1024 if _vmem_capacity_bytes() >= (96 << 20) else 512


def _choose_tile_m(M, tile_m, dtype):
    """Row-tile size: MXU-native multiple of 256, or the dtype sublane minimum."""
    sublane = max(8, 32 // jnp.dtype(dtype).itemsize)   # 8 for f32, 16 for bf16
    tm = min(tile_m, M)
    if tm >= M:
        if M >= 512:
            # Split the row axis so the "parallel" grid dim can shard across the
            # two v7x TensorCores (no-op on single-TC v5e/v6e).
            tm = ((pl.cdiv(M, 2) + 255) // 256) * 256
        else:
            return M
    if tm >= 256:
        return (tm // 256) * 256
    return max(sublane, (tm // sublane) * sublane)


# ----------------------------------------------------------------------------
# Pallas kernels: fused Linear (+ optional input ReLU), f32 MXU accumulation.
# ----------------------------------------------------------------------------
def _linear_bias_kernel(x_ref, w_ref, b_ref, o_ref):
    acc = jnp.dot(x_ref[...], w_ref[...], preferred_element_type=jnp.float32)
    o_ref[...] = (acc + b_ref[...]).astype(o_ref.dtype)


def _relu_linear_bias_kernel(x_ref, w_ref, b_ref, o_ref):
    a = jnp.maximum(x_ref[...], 0).astype(x_ref.dtype)   # fused ReLU, stays in matmul dtype
    acc = jnp.dot(a, w_ref[...], preferred_element_type=jnp.float32)
    o_ref[...] = (acc + b_ref[...]).astype(o_ref.dtype)


def _pallas_linear(x2d, w, b, *, relu_input=False, tile_m=None, out_dtype=None):
    """y = (relu(x) if relu_input else x) @ w + b, tiled over token rows.

    Activations stream through HBM in row tiles; the (K, N) weight and (1, N)
    f32 bias use constant index maps (resident in VMEM, single-buffered when
    pl.Buffered(1) is supported).  Row-tile axis is "parallel" for megacore.
    """
    M, K = x2d.shape
    Kw, N = w.shape
    assert K == Kw
    if out_dtype is None:
        out_dtype = x2d.dtype
    if tile_m is None:
        tile_m = _default_tile_m()
    b2d = b.astype(jnp.float32).reshape(1, N)

    tm = _choose_tile_m(M, tile_m, x2d.dtype)
    grid = (pl.cdiv(M, tm),)

    isz = lambda d: jnp.dtype(d).itemsize
    cost = pl.CostEstimate(
        flops=2 * M * K * N,
        transcendentals=0,
        bytes_accessed=(M * K * isz(x2d.dtype) + K * N * isz(w.dtype)
                        + N * 4 + M * N * isz(out_dtype)),
    )
    kernel = _relu_linear_bias_kernel if relu_input else _linear_bias_kernel
    compiler_params = pltpu.CompilerParams(
        dimension_semantics=("parallel",),          # megacore sharding on v7x
        vmem_limit_bytes=_vmem_limit_bytes(),
    )

    def build(single_buffer_resident):
        if single_buffer_resident:
            w_spec = pl.BlockSpec((K, N), lambda i: (0, 0), pipeline_mode=pl.Buffered(1))
            b_spec = pl.BlockSpec((1, N), lambda i: (0, 0), pipeline_mode=pl.Buffered(1))
        else:
            w_spec = pl.BlockSpec((K, N), lambda i: (0, 0))
            b_spec = pl.BlockSpec((1, N), lambda i: (0, 0))
        return pl.pallas_call(
            kernel,
            out_shape=jax.ShapeDtypeStruct((M, N), out_dtype),
            grid=grid,
            in_specs=[pl.BlockSpec((tm, K), lambda i: (i, 0)),   # streaming activations
                      w_spec,                                    # resident weight
                      b_spec],                                   # resident bias (f32)
            out_specs=pl.BlockSpec((tm, N), lambda i: (i, 0)),
            compiler_params=compiler_params,
            cost_estimate=cost,
        )

    try:
        return build(True)(x2d, w, b2d)
    except Exception:
        # TODO(synk): pipeline_mode=pl.Buffered(1) not supported on this jax
        # version -> fall back to default double-buffered resident weight/bias.
        return build(False)(x2d, w, b2d)


# ----------------------------------------------------------------------------
# nn.Fold / nn.Unfold equivalents, CHANNEL-LAST layout (G, L, C*kh*kw).
# TODO(synk): the col2im scatter-add / im2col gather is left to XLA — it is not
# a rectangular BlockSpec access pattern; the heavy compute is in the Pallas
# MXU kernels above.
# ----------------------------------------------------------------------------
def _fold_cl(patches, output_size, kernel_size, stride, padding, accum_dtype):
    """nn.Fold on channel-last patches: (G, L, C*kh*kw) -> (G, H, W, C)."""
    G, L, CKK = patches.shape
    kh, kw = kernel_size
    sh, sw = stride
    ph, pw = padding
    H, W = output_size
    C = CKK // (kh * kw)
    Hp, Wp = H + 2 * ph, W + 2 * pw
    Lh = (Hp - kh) // sh + 1
    Lw = (Wp - kw) // sw + 1
    assert Lh * Lw == L, "fold: block count mismatch"
    p = patches.reshape(G, Lh, Lw, C, kh, kw).astype(accum_dtype)
    out = jnp.zeros((G, Hp, Wp, C), accum_dtype)
    for i in range(kh):
        for j in range(kw):
            out = out.at[:, i:i + sh * Lh:sh, j:j + sw * Lw:sw, :].add(p[:, :, :, :, i, j])
    return out[:, ph:ph + H, pw:pw + W, :]


def _unfold_cl(img, kernel_size, stride, padding):
    """nn.Unfold on a channel-last image: (G, H, W, C) -> (G, L, C*kh*kw)."""
    G, H, W, C = img.shape
    kh, kw = kernel_size
    sh, sw = stride
    ph, pw = padding
    x = jnp.pad(img, ((0, 0), (ph, ph), (pw, pw), (0, 0)))
    Hp, Wp = H + 2 * ph, W + 2 * pw
    Lh = (Hp - kh) // sh + 1
    Lw = (Wp - kw) // sw + 1
    rows = []
    for i in range(kh):
        cols = []
        for j in range(kw):
            cols.append(x[:, i:i + sh * Lh:sh, j:j + sw * Lw:sw, :])   # (G, Lh, Lw, C)
        rows.append(jnp.stack(cols, axis=-1))                          # (G, Lh, Lw, C, kw)
    patches = jnp.stack(rows, axis=-2)                                 # (G, Lh, Lw, C, kh, kw)
    return patches.reshape(G, Lh * Lw, C * kh * kw)


@lru_cache(maxsize=None)
def _inv_overlap_normalizer(kernel_size, stride, padding, output_size):
    """1 / fold(ones): data-independent, computed once per geometry (f32)."""
    kh, kw = kernel_size
    sh, sw = stride
    ph, pw = padding
    H, W = output_size
    Lh = (H + 2 * ph - kh) // sh + 1
    Lw = (W + 2 * pw - kw) // sw + 1
    ones = jnp.ones((1, Lh * Lw, kh * kw), jnp.float32)
    den = _fold_cl(ones, output_size, kernel_size, stride, padding,
                   accum_dtype=jnp.float32)                            # (1, H, W, 1)
    return 1.0 / den


def _soft_composition(h, *, n_vecs, kernel_size, stride, padding, output_size):
    """fold/unfold overlap-averaging on channel-last (G, L, C*kk) patches.

    Operates directly on the (tokens, features) layout of the Linear outputs,
    so no full-activation transposes are needed.  Fold scatter-add and the
    normalizer stay in f32; the result is cast back to h.dtype after the scale
    (applied on the small folded image, not the unfolded activation).
    """
    M, hd = h.shape
    assert M % n_vecs == 0
    groups = M // n_vecs
    patches = h.reshape(groups, n_vecs, hd)                            # (G, L, C*kk)
    num = _fold_cl(patches, output_size, kernel_size, stride, padding,
                   accum_dtype=jnp.float32)                            # (G, H, W, C) f32
    inv_den = _inv_overlap_normalizer(kernel_size, stride, padding, output_size)
    img = (num * inv_den).astype(h.dtype)
    out = _unfold_cl(img, kernel_size, stride, padding)                # (G, L, C*kk)
    return out.reshape(M, hd)


# ----------------------------------------------------------------------------
# FusionFeedForward forward pass (inference).
# ----------------------------------------------------------------------------
def fusion_feed_forward(x, params, *, n_vecs, t2t_params, tile_m=None,
                        matmul_dtype=jnp.bfloat16):
    b, n, d_model = x.shape
    w1, b1, w2, b2 = params["w1"], params["b1"], params["w2"], params["b2"]
    assert (b * n) % n_vecs == 0

    kernel_size = tuple(t2t_params["kernel_size"])
    stride = tuple(t2t_params["stride"])
    padding = tuple(t2t_params["padding"])
    output_size = tuple(t2t_params["output_size"])

    # bf16 matmul inputs (f32 accumulation inside the kernels); bf16 activations
    # also halve HBM traffic through the memory-bound middle section.
    xm = x.reshape(b * n, d_model).astype(matmul_dtype)
    w1m = w1.astype(matmul_dtype)
    w2m = w2.astype(matmul_dtype)

    # conv1: Linear(d_model -> hd)   (Pallas MXU kernel, bias fused)
    h = _pallas_linear(xm, w1m, b1, tile_m=tile_m, out_dtype=matmul_dtype)

    # fold / unfold overlap-averaging ("soft composition"), channel-last
    h_avg = _soft_composition(h, n_vecs=n_vecs, kernel_size=kernel_size,
                              stride=stride, padding=padding,
                              output_size=output_size)

    # conv2: ReLU -> Dropout -> Linear(hd -> d_model) -> Dropout
    # TODO(synk): Dropout (p=0.1) is identity at inference; training-mode masking not implemented.
    y = _pallas_linear(h_avg, w2m, b2, relu_input=True, tile_m=tile_m,
                       out_dtype=x.dtype)
    return y.reshape(b, n, d_model)


# ----------------------------------------------------------------------------
# References for the correctness checks.
# ----------------------------------------------------------------------------
def _reference_matched(x, params, *, n_vecs, t2t_params, matmul_dtype=jnp.bfloat16):
    """Same math as the Pallas path (bf16 matmuls, channel-last middle) in plain JAX."""
    b, n, d_model = x.shape
    w1, b1, w2, b2 = params["w1"], params["b1"], params["w2"], params["b2"]
    kernel_size = tuple(t2t_params["kernel_size"])
    stride = tuple(t2t_params["stride"])
    padding = tuple(t2t_params["padding"])
    output_size = tuple(t2t_params["output_size"])

    xm = x.reshape(b * n, d_model).astype(matmul_dtype)
    h = (jnp.dot(xm, w1.astype(matmul_dtype), preferred_element_type=jnp.float32)
         + b1.astype(jnp.float32)).astype(matmul_dtype)
    h_avg = _soft_composition(h, n_vecs=n_vecs, kernel_size=kernel_size,
                              stride=stride, padding=padding, output_size=output_size)
    a = jnp.maximum(h_avg, 0).astype(matmul_dtype)
    y = (jnp.dot(a, w2.astype(matmul_dtype), preferred_element_type=jnp.float32)
         + b2.astype(jnp.float32)).astype(x.dtype)
    return y.reshape(b, n, d_model)


def _unfold_cf(img, kernel_size, stride, padding):
    """Channel-first nn.Unfold (independent reference): (N, C, H, W) -> (N, C*kk, L)."""
    N, C, H, W = img.shape
    kh, kw = kernel_size
    sh, sw = stride
    ph, pw = padding
    x = jnp.pad(img, ((0, 0), (0, 0), (ph, ph), (pw, pw)))
    Hp, Wp = H + 2 * ph, W + 2 * pw
    Lh = (Hp - kh) // sh + 1
    Lw = (Wp - kw) // sw + 1
    rows = []
    for i in range(kh):
        cols = []
        for j in range(kw):
            cols.append(x[:, :, i:i + sh * Lh:sh, j:j + sw * Lw:sw])
        rows.append(jnp.stack(cols, axis=2))
    patches = jnp.stack(rows, axis=2)
    return patches.reshape(N, C * kh * kw, Lh * Lw)


def _fold_cf(patches, output_size, kernel_size, stride, padding):
    """Channel-first nn.Fold (independent reference): (N, C*kk, L) -> (N, C, H, W)."""
    N, CKK, L = patches.shape
    kh, kw = kernel_size
    sh, sw = stride
    ph, pw = padding
    H, W = output_size
    C = CKK // (kh * kw)
    Hp, Wp = H + 2 * ph, W + 2 * pw
    Lh = (Hp - kh) // sh + 1
    Lw = (Wp - kw) // sw + 1
    assert Lh * Lw == L
    p = patches.reshape(N, C, kh, kw, Lh, Lw)
    out = jnp.zeros((N, C, Hp, Wp), patches.dtype)
    for i in range(kh):
        for j in range(kw):
            out = out.at[:, :, i:i + sh * Lh:sh, j:j + sw * Lw:sw].add(p[:, :, i, j])
    return out[:, :, ph:ph + H, pw:pw + W]


def _reference_f32(x, params, *, n_vecs, t2t_params):
    """Independent all-f32 reference with channel-first fold/unfold (original layout)."""
    b, n, d_model = x.shape
    w1, b1, w2, b2 = params["w1"], params["b1"], params["w2"], params["b2"]
    hd = w1.shape[1]
    kernel_size = tuple(t2t_params["kernel_size"])
    stride = tuple(t2t_params["stride"])
    padding = tuple(t2t_params["padding"])
    output_size = tuple(t2t_params["output_size"])
    kk = reduce(mul, kernel_size)

    h = x.reshape(b * n, d_model) @ w1 + b1
    groups = (b * n) // n_vecs
    hp = h.reshape(groups, n_vecs, hd).transpose(0, 2, 1)
    ones = jnp.ones((groups, kk, n_vecs), dtype=h.dtype)
    num = _fold_cf(hp, output_size, kernel_size, stride, padding)
    den = _fold_cf(ones, output_size, kernel_size, stride, padding)
    havg = _unfold_cf(num / den, kernel_size, stride, padding)
    havg = havg.transpose(0, 2, 1).reshape(b * n, hd)
    y = jnp.maximum(havg, 0.0) @ w2 + b2
    return y.reshape(b, n, d_model)


if __name__ == "__main__":
    # Small shapes consistent with the module: kernel_size=(7,7), stride=(3,3),
    # padding=(3,3), output_size=(10,10) -> 4x4 = 16 patches per frame (n_vecs).
    t2t_params = dict(kernel_size=(7, 7), stride=(3, 3), padding=(3, 3),
                      output_size=(10, 10))
    d_model, dim_hidden = 64, 8
    hd = reduce(mul, t2t_params["kernel_size"]) * dim_hidden    # 392
    n_vecs = 16
    b, frames = 2, 2
    n = frames * n_vecs                                         # 32 tokens per batch

    key = jax.random.PRNGKey(0)
    kx, k1, k2, k3, k4 = jax.random.split(key, 5)
    x = jax.random.normal(kx, (b, n, d_model), dtype=jnp.float32)
    params = {
        "w1": 0.05 * jax.random.normal(k1, (d_model, hd), dtype=jnp.float32),
        "b1": 0.05 * jax.random.normal(k2, (hd,), dtype=jnp.float32),
        "w2": 0.05 * jax.random.normal(k3, (hd, d_model), dtype=jnp.float32),
        "b2": 0.05 * jax.random.normal(k4, (d_model,), dtype=jnp.float32),
    }

    out = fusion_feed_forward(x, params, n_vecs=n_vecs, t2t_params=t2t_params)
    out = jax.block_until_ready(out)
    assert out.shape == (b, n, d_model)
    out_f32 = out.astype(jnp.float32)

    # 1) Matched-math reference (same bf16 matmul inputs, same channel-last
    #    middle): isolates Pallas tiling/fusion correctness -> tight tolerance.
    ref_m = _reference_matched(x, params, n_vecs=n_vecs, t2t_params=t2t_params)
    err_m = float(jnp.max(jnp.abs(out_f32 - ref_m.astype(jnp.float32))))
    assert jnp.allclose(out_f32, ref_m.astype(jnp.float32), atol=1e-3, rtol=1e-3), \
        f"mismatch vs matched reference: {err_m}"

    # 2) Independent all-f32, channel-first reference: checks the channel-last
    #    rewrite semantics; loose tolerance covers bf16 matmul rounding.
    ref_f = _reference_f32(x, params, n_vecs=n_vecs, t2t_params=t2t_params)
    err_f = float(jnp.max(jnp.abs(out_f32 - ref_f)))
    assert jnp.allclose(out_f32, ref_f, atol=5e-2, rtol=5e-2), \
        f"mismatch vs f32 reference: {err_f}"

    print("KERNEL_OK")
</pallas_src>

<mosaic_0001>
module attributes {stable_mosaic.version = 11 : i64} {
  func.func @_linear_bias_kernel(%arg0: i32, %arg1: memref<64x64xbf16, #tpu.memory_space<vmem>>, %arg2: memref<64x392xbf16, #tpu.memory_space<vmem>>, %arg3: memref<1x392xf32, #tpu.memory_space<vmem>>, %arg4: memref<64x392xbf16, #tpu.memory_space<vmem>>) attributes {dimension_semantics = [#tpu.dimension_semantics<parallel>], iteration_bounds = array<i64: 1>, scalar_prefetch = 0 : i64, scratch_operands = 0 : i64, tpu.core_type = #tpu.core_type<tc>, window_params = [{transform_indices = @transform_0, window_bounds = array<i64: 64, 64>}, {pipeline_mode = #tpu.pipeline_mode<synchronous>, transform_indices = @transform_1, window_bounds = array<i64: 64, 392>}, {pipeline_mode = #tpu.pipeline_mode<synchronous>, transform_indices = @transform_2, window_bounds = array<i64: 1, 392>}, {transform_indices = @transform_3, window_bounds = array<i64: 64, 392>}]} {
    %c0 = arith.constant 0 : index
    %c0_0 = arith.constant 0 : index
    %0 = vector.load %arg1[%c0, %c0_0] : memref<64x64xbf16, #tpu.memory_space<vmem>>, vector<64x64xbf16>
    %c0_1 = arith.constant 0 : index
    %c0_2 = arith.constant 0 : index
    %1 = vector.load %arg2[%c0_1, %c0_2] : memref<64x392xbf16, #tpu.memory_space<vmem>>, vector<64x392xbf16>
    %cst = arith.constant dense<0.000000e+00> : vector<64x392xf32>
    %2 = tpu.matmul %0, %1, %cst {dimension_numbers = #tpu.dot_dimension_numbers<[1], [0], [0], [1], [0, 0, 1, 1], [], []>} : vector<64x64xbf16>, vector<64x392xbf16>, vector<64x392xf32> -> vector<64x392xf32>
    %c0_3 = arith.constant 0 : index
    %c0_4 = arith.constant 0 : index
    %3 = vector.load %arg3[%c0_3, %c0_4] : memref<1x392xf32, #tpu.memory_space<vmem>>, vector<1x392xf32>
    %4 = vector.broadcast %3 : vector<1x392xf32> to vector<64x392xf32>
    %5 = arith.addf %2, %4 : vector<64x392xf32>
    %6 = arith.truncf %5 : vector<64x392xf32> to vector<64x392xbf16>
    %c0_5 = arith.constant 0 : index
    %c0_6 = arith.constant 0 : index
    %7 = vector.load %arg4[%c0_5, %c0_6] : memref<64x392xbf16, #tpu.memory_space<vmem>>, vector<64x392xbf16>
    tpu.vector_store %arg4[%c0_5, %c0_6], %6 {strides = array<i32>} : memref<64x392xbf16, #tpu.memory_space<vmem>>, vector<64x392xbf16>,
    return
  }
  func.func @transform_0(%arg0: i32) -> (i32, i32) {
    %c0_i32 = arith.constant 0 : i32
    %c0_i32_0 = arith.constant 0 : i32
    return %arg0, %c0_i32 : i32, i32
  }
  func.func @transform_1(%arg0: i32) -> (i32, i32) {
    %c0_i32 = arith.constant 0 : i32
    %c0_i32_0 = arith.constant 0 : i32
    %c0_i32_1 = arith.constant 0 : i32
    return %c0_i32, %c0_i32_0 : i32, i32
  }
  func.func @transform_2(%arg0: i32) -> (i32, i32) {
    %c0_i32 = arith.constant 0 : i32
    %c0_i32_0 = arith.constant 0 : i32
    %c0_i32_1 = arith.constant 0 : i32
    return %c0_i32, %c0_i32_0 : i32, i32
  }
  func.func @transform_3(%arg0: i32) -> (i32, i32) {
    %c0_i32 = arith.constant 0 : i32
    %c0_i32_0 = arith.constant 0 : i32
    return %arg0, %c0_i32 : i32, i32
  }
}

module attributes {stable_mosaic.version = 11 : i64} {
  func.func @_linear_bias_kernel(%arg0: i32, %arg1: memref<64x64xbf16, #tpu.memory_space<vmem>>, %arg2: memref<64x392xbf16, #tpu.memory_space<vmem>>, %arg3: memref<1x392xf32, #tpu.memory_space<vmem>>, %arg4: memref<64x392xbf16, #tpu.memory_space<vmem>>) attributes {dimension_semantics = [#tpu.dimension_semantics<parallel>], iteration_bounds = array<i64: 1>, scalar_prefetch = 0 : i64, scratch_operands = 0 : i64, tpu.core_type = #tpu.core_type<tc>, window_params = [{transform_indices = @transform_0, window_bounds = array<i64: 64, 64>}, {pipeline_mode = #tpu.pipeline_mode<synchronous>, transform_indices = @transform_1, window_bounds = array<i64: 64, 392>}, {pipeline_mode = #tpu.pipeline_mode<synchronous>, transform_indices = @transform_2, window_bounds = array<i64: 1, 392>}, {transform_indices = @transform_3, window_bounds = array<i64: 64, 392>}]} {
    %c0 = arith.constant 0 : index
    %c0_0 = arith.constant 0 : index
    %0 = vector.load %arg1[%c0, %c0_0] : memref<64x64xbf16, #tpu.memory_space<vmem>>, vector<64x64xbf16>
    %c0_1 = arith.constant 0 : index
    %c0_2 = arith.constant 0 : index
    %1 = vector.load %arg2[%c0_1, %c0_2] : memref<64x392xbf16, #tpu.memory_space<vmem>>, vector<64x392xbf16>
    %cst = arith.constant dense<0.000000e+00> : vector<64x392xf32>
    %2 = tpu.matmul %0, %1, %cst {dimension_numbers = #tpu.dot_dimension_numbers<[1], [0], [0], [1], [0, 0, 1, 1], [], []>} : vector<64x64xbf16>, vector<64x392xbf16>, vector<64x392xf32> -> vector<64x392xf32>
    %c0_3 = arith.constant 0 : index
    %c0_4 = arith.constant 0 : index
    %3 = vector.load %arg3[%c0_3, %c0_4] : memref<1x392xf32, #tpu.memory_space<vmem>>, vector<1x392xf32>
    %4 = vector.broadcast %3 : vector<1x392xf32> to vector<64x392xf32>
    %5 = arith.addf %2, %4 : vector<64x392xf32>
    %6 = arith.truncf %5 : vector<64x392xf32> to vector<64x392xbf16>
    %c0_5 = arith.constant 0 : index
    %c0_6 = arith.constant 0 : index
    %7 = vector.load %arg4[%c0_5, %c0_6] : memref<64x392xbf16, #tpu.memory_space<vmem>>, vector<64x392xbf16>
    tpu.vector_store %arg4[%c0_5, %c0_6], %6 {strides = array<i32>} : memref<64x392xbf16, #tpu.memory_space<vmem>>, vector<64x392xbf16>,
    return
  }
  func.func @transform_0(%arg0: i32) -> (i32, i32) {
    %c0_i32 = arith.constant 0 : i32
    %c0_i32_0 = arith.constant 0 : i32
    return %arg0, %c0_i32 : i32, i32
  }
  func.func @transform_1(%arg0: i32) -> (i32, i32) {
    %c0_i32 = arith.constant 0 : i32
    %c0_i32_0 = arith.constant 0 : i32
    %c0_i32_1 = arith.constant 0 : i32
    return %c0_i32, %c0_i32_0 : i32, i32
  }
  func.func @transform_2(%arg0: i32) -> (i32, i32) {
    %c0_i32 = arith.constant 0 : i32
    %c0_i32_0 = arith.constant 0 : i32
    %c0_i32_1 = arith.constant 0 : i32
    return %c0_i32, %c0_i32_0 : i32, i32
  }
  func.func @transform_3(%arg0: i32) -> (i32, i32) {
    %c0_i32 = arith.constant 0 : i32
    %c0_i32_0 = arith.constant 0 : i32
    return %arg0, %c0_i32 : i32, i32
  }
}

</mosaic_0001>

<bundles_post_ra>
// kernel: tpu_custom_call.1
= control target key start
LH: loop header
LB: loop body
LE: loop exit
PB: predicated region body
PF: predicated region fallthrough
CT: control target
= control target key end

     0   :  { %8 = vsyncpa [#allocation3], 0  ;;  %s791_s0 = inlined_call_operand.hbm [shape: bf16[64,64], index: 0, kind: input, shape index: {}]   ;;  %s792_s1 = inlined_call_operand.hbm [shape: bf16[64,392], index: 1, kind: input, shape index: {}]   ;;  %s793_s2 = inlined_call_operand.vmem [shape: f32[1,392], index: 2, kind: input, shape index: {}]   ;;  %s794_s3 = inlined_call_operand.hbm [shape: bf16[64,392], index: 3, kind: output, shape index: {}]  }
   0x1   :  { %9 = vsyncpa [#allocation6], 0 }
   0x2   :  { %10 = vsyncpa [#allocation4], 0  ;;  %s650_s12 = smov [#allocation2]   ;;  %s578_s16 = scalar_lea.hbm %s791_s0, 512 }
   0x3   :  { %s16_s13 = sshll.u32 %s650_s12, 4  ;;  %p579_p0 = scmp.ne.s32.totalorder %s791_s0, %s578_s16  ;;  %s17_s13 = int_to_ptr.vmem [resolvable:$true] %s16_s13 }
   0x4   :  { %p582_p1 = scmp.lt.u32.totalorder %s578_s16, %s791_s0 }
   0x6   :  { %p584_p2 = pnand %p582_p1, %p579_p0 }
   0x8   :  { %587 = shalt.err (!%p584_p2)
}
   0x9   :  { %s588_s21 = scalar_lea.vmem %s17_s13, 512  ;;  %p593_p4 = scmp.lt.s32.totalorder %s17_s13, %s17_s13 }
   0xa   :  { %p589_p3 = scmp.ne.s32.totalorder %s17_s13, %s588_s21  ;;  %p594_p5 = scmp.lt.s32.totalorder %s588_s21, %s588_s21 }
   0xc   :  { %p595_p6 = por %p594_p5, %p593_p4 }
   0xe   :  { %p596_p7 = pnand %p595_p6, %p589_p3 }
  0x10   :  { %599 = shalt.err (!%p596_p7)
}
  0x11   :  { %s651_s22 = smov 64   ;;  %s652_s23 = smov 4  }
  0x12   :  { %22 = dma.hbm_to_vmem [thread:$0]  %s791_s0, 512, %s17_s13, [#allocation3], %s651_s22, %s651_s22, %s652_s23  }
  0x13   :  { %s653_s26 = smov [#allocation5]   ;;  %s600_s30 = scalar_lea.hbm %s792_s1, 2048 }
  0x14   :  { %s28_s27 = sshll.u32 %s653_s26, 4  ;;  %p601_p8 = scmp.ne.s32.totalorder %s792_s1, %s600_s30  ;;  %s29_s27 = int_to_ptr.vmem [resolvable:$true] %s28_s27 }
  0x15   :  { %p604_p9 = scmp.lt.u32.totalorder %s600_s30, %s792_s1 }
  0x17   :  { %p606_p10 = pnand %p604_p9, %p601_p8 }
  0x19   :  { %609 = shalt.err (!%p606_p10)
}
  0x1a   :  { %s610_s8 = scalar_lea.vmem %s29_s27, 2048  ;;  %p615_p12 = scmp.lt.s32.totalorder %s29_s27, %s29_s27 }
  0x1b   :  { %p611_p11 = scmp.ne.s32.totalorder %s29_s27, %s610_s8  ;;  %p616_p13 = scmp.lt.s32.totalorder %s610_s8, %s610_s8 }
  0x1d   :  { %p617_p0 = por %p616_p13, %p615_p12 }
  0x1f   :  { %p618_p1 = pnand %p617_p0, %p611_p11 }
  0x21   :  { %621 = shalt.err (!%p618_p1)
}
  0x22   :  { %s654_s0 = smov 256   ;;  %s655_s9 = smov 16  }
  0x23   :  { %34 = dma.hbm_to_vmem [thread:$0]  %s792_s1, 2048, %s29_s27, [#allocation6], %s654_s0, %s654_s0, %s655_s9  }
  0x24   :  { %644 = dma.done.wait [#allocation3], 512  }
  0x25   :  { %645 = vsyncadd [#allocation3], 4294966784 }
  0x26   :  { %646 = dma.done.wait [#allocation6], 2048  }
  0x27   :  { %647 = vsyncadd [#allocation6], 4294965248  ;;  %v656_v0 = vmov 0   ;;  %v550_v1 = vld [vmem:[#allocation5 + $0x4] ss:$16 sps:$4 sm:$0xff]   ;;  %vm190_vm0 = vcmask 523264   ;;  %v70_v21 = vlaneseq }
  0x28   :  { %235 = vmatprep.mubr.bf16.mxu0 %v656_v0  ;;  %308 = vmatprep.mubr.bf16.mxu1 %v656_v0  ;;  %v552_v2 = vld [vmem:[#allocation5 + $0xc] ss:$16 sps:$4 sm:$0xff]   ;;  %v554_v3 = vld [vmem:[#allocation5] ss:$16 sps:$4 sm:$0xff]   ;;  %v555_v4 = vld [vmem:[#allocation5 + $0x8] ss:$16 sps:$4 sm:$0xff]  }
  0x29   :  { %203 = vmatprep.subr.bf16.mxu0 %v550_v1  ;;  %276 = vmatprep.subr.bf16.mxu1 %v552_v2  ;;  %v556_v5 = vld [vmem:[#allocation5 + $0x24] ss:$16 sps:$4 sm:$0xff]   ;;  %v558_v6 = vld [vmem:[#allocation5 + $0x2c] ss:$16 sps:$4 sm:$0xff]   ;;  %v560_v7 = vld [vmem:[#allocation5 + $0x20] ss:$16 sps:$4 sm:$0xff]  }
  0x2a   :  { %204 = vmatpush1.bf16.msra.mxu0 %v554_v3  ;;  %277 = vmatpush1.bf16.msra.mxu1 %v555_v4  ;;  %v561_v8 = vld [vmem:[#allocation5 + $0x28] ss:$16 sps:$4 sm:$0xff]   ;;  %v562_v9 = vld [vmem:[#allocation5 + $0x44] ss:$16 sps:$4 sm:$0xff]   ;;  %v564_v10 = vld [vmem:[#allocation5 + $0x4c] ss:$16 sps:$4 sm:$0xff]  }
  0x2b   :  { %205 = vmatprep.subr.bf16.mxu0 %v556_v5  ;;  %278 = vmatprep.subr.bf16.mxu1 %v558_v6  ;;  %v566_v11 = vld [vmem:[#allocation5 + $0x40] ss:$16 sps:$4 sm:$0xff]   ;;  %v567_v12 = vld [vmem:[#allocation5 + $0x48] ss:$16 sps:$4 sm:$0xff]   ;;  %v568_v13 = vld [vmem:[#allocation5 + $0x64] ss:$16 sps:$4 sm:$0xff]  }
  0x2c   :  { %v570_v14 = vld [vmem:[#allocation5 + $0x6c] ss:$16 sps:$4 sm:$0xff]   ;;  %v572_v15 = vld [vmem:[#allocation5 + $0x60] ss:$16 sps:$4 sm:$0xff]   ;;  %v573_v16 = vld [vmem:[#allocation5 + $0x68] ss:$16 sps:$4 sm:$0xff]  }
  0x2d   :  { %v574_v17 = vld [vmem:[#allocation2] sm:$0xff]   ;;  %v575_v18 = vld [vmem:[#allocation2 + $0x8] sm:$0xff]   ;;  %v576_v19 = vld [vmem:[#allocation2 + $0x10] sm:$0xff]   ;;  %v71_v22 = vshrl.u32 %v70_v21, 7  ;;  %vm446_vm1 = vcmask 1043456   ;;  %vm447_vm2 = vcmask 64516  }
  0x2e   :  { %206 = vmatpush1.bf16.msra.mxu0 %v560_v7  ;;  %279 = vmatpush1.bf16.msra.mxu1 %v561_v8  ;;  %v577_v20 = vld [vmem:[#allocation2 + $0x18] sm:$0xff]   ;;  %v68_v25 = vld [vmem:[%s793_s2] sm:$0xf]  ;;  %vm728_vm3 = vmor %vm447_vm2, %vm446_vm1  ;;  %s657_s2 = smov [#allocation7]  }
  0x2f   :  { %207 = vmatprep.subr.bf16.mxu0 %v562_v9  ;;  %280 = vmatprep.subr.bf16.mxu1 %v564_v10  ;;  %v72_v23 = vsub.s32 0, %v71_v22  ;;  %v80_v24 = vsub.s32 2, %v71_v22  ;;  %v76_v26 = vsub.s32 1, %v71_v22  ;;  %v84_v27 = vsub.s32 3, %v71_v22  ;;  %s469_s13 = sshll.u32 %s657_s2, 4  ;;  %s470_s13 = int_to_ptr.vmem [resolvable:$true] %s469_s13 }
  0x30   :  { %s622_s14 = scalar_lea.vmem %s470_s13, 2048  ;;  %p627_p3 = scmp.lt.s32.totalorder %s470_s13, %s470_s13 }
  0x31   :  { %v716_v28 = vrot.slane %v68_v25, %v72_v23  ;;  %v718_v29 = vrot.slane %v68_v25, %v80_v24  ;;  %v720_v30 = vrot.slane %v68_v25, %v76_v26  ;;  %v722_v31 = vrot.slane %v68_v25, %v84_v27  ;;  %p623_p2 = scmp.ne.s32.totalorder %s470_s13, %s622_s14  ;;  %p628_p4 = scmp.lt.s32.totalorder %s622_s14, %s622_s14 }
  0x32   :  { %208 = vmatpush1.bf16.msra.mxu0 %v566_v11  ;;  %281 = vmatpush1.bf16.msra.mxu1 %v567_v12 }
  0x33   :  { %209 = vmatprep.subr.bf16.mxu0 %v568_v13  ;;  %282 = vmatprep.subr.bf16.mxu1 %v570_v14  ;;  %p629_p5 = por %p628_p4, %p627_p3 }
  0x35   :  { %p630_p6 = pnand %p629_p5, %p623_p2 }
  0x36   :  { %210 = vmatpush1.bf16.msra.mxu0 %v572_v15  ;;  %283 = vmatpush1.bf16.msra.mxu1 %v573_v16 }
  0x39   :  { %502 = vmatmul.mubr.msk.bf16.vlgmr.msra.gmra.mrb[0].mxu0 %vm190_vm0, %v574_v17  ;;  %506 = vmatmul.mubr.msk.bf16.vlgmr.msra.gmra.mrb[0].mxu1 %vm190_vm0, %v574_v17 }
  0x3a   :  { %245 = vmatprep.mubr.bf16.mxu0 %v656_v0  ;;  %318 = vmatprep.mubr.bf16.mxu1 %v656_v0 }
  0x41   :  { %503 = vmatmul.mubr.msk.bf16.gmra.mrb[4].mxu0 %vm190_vm0, %v575_v18  ;;  %507 = vmatmul.mubr.msk.bf16.gmra.mrb[4].mxu1 %vm190_vm0, %v575_v18 }
  0x42   :  { %255 = vmatprep.mubr.bf16.mxu0 %v656_v0  ;;  %328 = vmatprep.mubr.bf16.mxu1 %v656_v0 }
  0x49   :  { %504 = vmatmul.mubr.msk.bf16.gmra.mrb[8].mxu0 %vm190_vm0, %v576_v19  ;;  %508 = vmatmul.mubr.msk.bf16.gmra.mrb[8].mxu1 %vm190_vm0, %v576_v19 }
  0x4a   :  { %265 = vmatprep.mubr.bf16.mxu0 %v656_v0  ;;  %338 = vmatprep.mubr.bf16.mxu1 %v656_v0 }
  0x51   :  { %505 = vmatmul.mubr.msk.bf16.gmra.mrb[12].mxu0 %vm190_vm0, %v577_v20  ;;  %509 = vmatmul.mubr.msk.bf16.gmra.mrb[12].mxu1 %vm190_vm0, %v577_v20 }
 0x10c   :  { %v237_v32 = vpop.f32.mrb[0].mxu0  ;;  %v310_v33 = vpop.f32.mrb[0].mxu1 }
 0x10d   :  { %v238_v34 = vadd.f32 %v237_v32, %v716_v28  ;;  %v311_v35 = vadd.f32 %v310_v33, %v718_v29  ;;  %v239_v36 = vpop.f32.mrb[1].mxu0  ;;  %v312_v37 = vpop.f32.mrb[1].mxu1 }
 0x10e   :  { %v240_v38 = vadd.f32 %v239_v36, %v720_v30  ;;  %v313_v39 = vadd.f32 %v312_v37, %v722_v31  ;;  %v241_v40 = vpop.f32.mrb[2].mxu0  ;;  %v314_v41 = vpop.f32.mrb[2].mxu1 }
 0x10f   :  { %v242_v43 = vadd.f32 %v241_v40, %v716_v28  ;;  %v315_v44 = vadd.f32 %v314_v41, %v718_v29  ;;  %v243_v45 = vpop.f32.mrb[3].mxu0  ;;  %v316_v46 = vpop.f32.mrb[3].mxu1 }
 0x110   :  { %v526_v47 = vpack.c.bf16 %v240_v38, %v238_v34  ;;  %v527_v48 = vpack.c.bf16 %v313_v39, %v311_v35  ;;  %v244_v49 = vadd.f32 %v243_v45, %v720_v30  ;;  %v317_v50 = vadd.f32 %v316_v46, %v722_v31 }
 0x112   :  { %445 = vst [vmem:[#allocation7] sm:$0xff] %v526_v47  ;;  %449 = vst.msk [vmem:[#allocation7 + $0x8] sm:$0xff] %vm728_vm3, %v527_v48  ;;  %v528_v51 = vpack.c.bf16 %v244_v49, %v242_v43  ;;  %v529_v52 = vpack.c.bf16 %v317_v50, %v315_v44 }
 0x114   :  { %450 = vst [vmem:[#allocation7 + $0x10] sm:$0xff] %v528_v51  ;;  %451 = vst.msk [vmem:[#allocation7 + $0x18] sm:$0xff] %vm728_vm3, %v529_v52  ;;  %v247_v53 = vpop.f32.mrb[4].mxu0  ;;  %v320_v54 = vpop.f32.mrb[4].mxu1 }
 0x115   :  { %v248_v55 = vadd.f32 %v247_v53, %v716_v28  ;;  %v321_v56 = vadd.f32 %v320_v54, %v718_v29  ;;  %v249_v57 = vpop.f32.mrb[5].mxu0  ;;  %v322_v58 = vpop.f32.mrb[5].mxu1 }
 0x116   :  { %v250_v59 = vadd.f32 %v249_v57, %v720_v30  ;;  %v323_v60 = vadd.f32 %v322_v58, %v722_v31  ;;  %v251_v61 = vpop.f32.mrb[6].mxu0  ;;  %v324_v62 = vpop.f32.mrb[6].mxu1 }
 0x117   :  { %v252_v63 = vadd.f32 %v251_v61, %v716_v28  ;;  %v325_v0 = vadd.f32 %v324_v62, %v718_v29  ;;  %v253_v1 = vpop.f32.mrb[7].mxu0  ;;  %v326_v2 = vpop.f32.mrb[7].mxu1 }
 0x118   :  { %v530_v3 = vpack.c.bf16 %v250_v59, %v248_v55  ;;  %v531_v4 = vpack.c.bf16 %v323_v60, %v321_v56  ;;  %v254_v5 = vadd.f32 %v253_v1, %v720_v30  ;;  %v327_v6 = vadd.f32 %v326_v2, %v722_v31 }
 0x11a   :  { %452 = vst [vmem:[#allocation7 + $0x20] sm:$0xff] %v530_v3  ;;  %453 = vst.msk [vmem:[#allocation7 + $0x28] sm:$0xff] %vm728_vm3, %v531_v4  ;;  %v532_v7 = vpack.c.bf16 %v254_v5, %v252_v63  ;;  %v533_v8 = vpack.c.bf16 %v327_v6, %v325_v0 }
 0x11c   :  { %454 = vst [vmem:[#allocation7 + $0x30] sm:$0xff] %v532_v7  ;;  %455 = vst.msk [vmem:[#allocation7 + $0x38] sm:$0xff] %vm728_vm3, %v533_v8  ;;  %v257_v9 = vpop.f32.mrb[8].mxu0  ;;  %v330_v10 = vpop.f32.mrb[8].mxu1 }
 0x11d   :  { %v258_v11 = vadd.f32 %v257_v9, %v716_v28  ;;  %v331_v12 = vadd.f32 %v330_v10, %v718_v29  ;;  %v259_v13 = vpop.f32.mrb[9].mxu0  ;;  %v332_v14 = vpop.f32.mrb[9].mxu1 }
 0x11e   :  { %v260_v15 = vadd.f32 %v259_v13, %v720_v30  ;;  %v333_v16 = vadd.f32 %v332_v14, %v722_v31  ;;  %v261_v17 = vpop.f32.mrb[10].mxu0  ;;  %v334_v18 = vpop.f32.mrb[10].mxu1 }
 0x11f   :  { %v262_v19 = vadd.f32 %v261_v17, %v716_v28  ;;  %v335_v20 = vadd.f32 %v334_v18, %v718_v29  ;;  %v263_v21 = vpop.f32.mrb[11].mxu0  ;;  %v336_v22 = vpop.f32.mrb[11].mxu1 }
 0x120   :  { %v534_v23 = vpack.c.bf16 %v260_v15, %v258_v11  ;;  %v535_v24 = vpack.c.bf16 %v333_v16, %v331_v12  ;;  %v264_v25 = vadd.f32 %v263_v21, %v720_v30  ;;  %v337_v26 = vadd.f32 %v336_v22, %v722_v31 }
 0x122   :  { %456 = vst [vmem:[#allocation7 + $0x40] sm:$0xff] %v534_v23  ;;  %457 = vst.msk [vmem:[#allocation7 + $0x48] sm:$0xff] %vm728_vm3, %v535_v24  ;;  %v536_v27 = vpack.c.bf16 %v264_v25, %v262_v19  ;;  %v537_v32 = vpack.c.bf16 %v337_v26, %v335_v20 }
 0x124   :  { %458 = vst [vmem:[#allocation7 + $0x50] sm:$0xff] %v536_v27  ;;  %459 = vst.msk [vmem:[#allocation7 + $0x58] sm:$0xff] %vm728_vm3, %v537_v32  ;;  %v267_v33 = vpop.f32.mrb[12].mxu0  ;;  %v340_v34 = vpop.f32.mrb[12].mxu1 }
 0x125   :  { %v268_v35 = vadd.f32 %v267_v33, %v716_v28  ;;  %v341_v36 = vadd.f32 %v340_v34, %v718_v29  ;;  %v269_v37 = vpop.f32.mrb[13].mxu0  ;;  %v342_v38 = vpop.f32.mrb[13].mxu1 }
 0x126   :  { %v270_v39 = vadd.f32 %v269_v37, %v720_v30  ;;  %v343_v40 = vadd.f32 %v342_v38, %v722_v31  ;;  %v271_v41 = vpop.f32.mrb[14].mxu0  ;;  %v344_v43 = vpop.f32.mrb[14].mxu1 }
 0x127   :  { %v272_v44 = vadd.f32 %v271_v41, %v716_v28  ;;  %v345_v45 = vadd.f32 %v344_v43, %v718_v29  ;;  %v273_v46 = vpop.f32.mrb[15].mxu0  ;;  %v346_v47 = vpop.f32.mrb[15].mxu1 }
 0x128   :  { %v538_v48 = vpack.c.bf16 %v270_v39, %v268_v35  ;;  %v539_v49 = vpack.c.bf16 %v343_v40, %v341_v36  ;;  %v274_v50 = vadd.f32 %v273_v46, %v720_v30  ;;  %v347_v51 = vadd.f32 %v346_v47, %v722_v31 }
 0x12a   :  { %460 = vst [vmem:[#allocation7 + $0x60] sm:$0xff] %v538_v48  ;;  %461 = vst.msk [vmem:[#allocation7 + $0x68] sm:$0xff] %vm728_vm3, %v539_v49  ;;  %v540_v52 = vpack.c.bf16 %v274_v50, %v272_v44  ;;  %v541_v53 = vpack.c.bf16 %v347_v51, %v345_v45 }
 0x12c   :  { %462 = vst [vmem:[#allocation7 + $0x70] sm:$0xff] %v540_v52  ;;  %463 = vst.msk [vmem:[#allocation7 + $0x78] sm:$0xff] %vm728_vm3, %v541_v53 }
 0x12d   :  { %633 = shalt.err (!%p630_p6)
}
 0x12e   :  { %s634_s17 = scalar_lea.hbm %s794_s3, 2048 }
 0x12f   :  { %p635_p7 = scmp.ne.s32.totalorder %s794_s3, %s634_s17  ;;  %p638_p8 = scmp.lt.u32.totalorder %s634_s17, %s794_s3 }
 0x131   :  { %p640_p9 = pnand %p638_p8, %p635_p7 }
 0x133   :  { %643 = shalt.err (!%p640_p9)
}
 0x134   :  { %475 = dma.vmem_to_hbm [thread:$0]  %s470_s13, 2048, %s794_s3, [#allocation4], %s654_s0, %s654_s0, %s655_s9  }
 0x135   :  { %648 = dma.done.wait [#allocation4], 2048  }
 0x136   :  { %649 = vsyncadd [#allocation4], 4294965248 }
 0x137   :  { %479 = vsyncpa [#allocation3], 1 }
 0x138   :  { %480 = vsyncpa [#allocation6], 1 }
 0x139   :  { %481 = vsyncpa [#allocation4], 1 }

// kernel: tpu_custom_call.1
= control target key start
LH: loop header
LB: loop body
LE: loop exit
PB: predicated region body
PF: predicated region fallthrough
CT: control target
= control target key end

     0   :  { %8 = vsyncpa [#allocation3], 0  ;;  %s791_s0 = inlined_call_operand.hbm [shape: bf16[64,64], index: 0, kind: input, shape index: {}]   ;;  %s792_s1 = inlined_call_operand.hbm [shape: bf16[64,392], index: 1, kind: input, shape index: {}]   ;;  %s793_s2 = inlined_call_operand.vmem [shape: f32[1,392], index: 2, kind: input, shape index: {}]   ;;  %s794_s3 = inlined_call_operand.hbm [shape: bf16[64,392], index: 3, kind: output, shape index: {}]  }
   0x1   :  { %9 = vsyncpa [#allocation6], 0 }
   0x2   :  { %10 = vsyncpa [#allocation4], 0  ;;  %s650_s12 = smov [#allocation2]   ;;  %s578_s16 = scalar_lea.hbm %s791_s0, 512 }
   0x3   :  { %s16_s13 = sshll.u32 %s650_s12, 4  ;;  %p579_p0 = scmp.ne.s32.totalorder %s791_s0, %s578_s16  ;;  %s17_s13 = int_to_ptr.vmem [resolvable:$true] %s16_s13 }
   0x4   :  { %p582_p1 = scmp.lt.u32.totalorder %s578_s16, %s791_s0 }
   0x6   :  { %p584_p2 = pnand %p582_p1, %p579_p0 }
   0x8   :  { %587 = shalt.err (!%p584_p2)
}
   0x9   :  { %s588_s21 = scalar_lea.vmem %s17_s13, 512  ;;  %p593_p4 = scmp.lt.s32.totalorder %s17_s13, %s17_s13 }
   0xa   :  { %p589_p3 = scmp.ne.s32.totalorder %s17_s13, %s588_s21  ;;  %p594_p5 = scmp.lt.s32.totalorder %s588_s21, %s588_s21 }
   0xc   :  { %p595_p6 = por %p594_p5, %p593_p4 }
   0xe   :  { %p596_p7 = pnand %p595_p6, %p589_p3 }
  0x10   :  { %599 = shalt.err (!%p596_p7)
}
  0x11   :  { %s651_s22 = smov 64   ;;  %s652_s23 = smov 4  }
  0x12   :  { %22 = dma.hbm_to_vmem [thread:$0]  %s791_s0, 512, %s17_s13, [#allocation3], %s651_s22, %s651_s22, %s652_s23  }
  0x13   :  { %s653_s26 = smov [#allocation5]   ;;  %s600_s30 = scalar_lea.hbm %s792_s1, 2048 }
  0x14   :  { %s28_s27 = sshll.u32 %s653_s26, 4  ;;  %p601_p8 = scmp.ne.s32.totalorder %s792_s1, %s600_s30  ;;  %s29_s27 = int_to_ptr.vmem [resolvable:$true] %s28_s27 }
  0x15   :  { %p604_p9 = scmp.lt.u32.totalorder %s600_s30, %s792_s1 }
  0x17   :  { %p606_p10 = pnand %p604_p9, %p601_p8 }
  0x19   :  { %609 = shalt.err (!%p606_p10)
}
  0x1a   :  { %s610_s8 = scalar_lea.vmem %s29_s27, 2048  ;;  %p615_p12 = scmp.lt.s32.totalorder %s29_s27, %s29_s27 }
  0x1b   :  { %p611_p11 = scmp.ne.s32.totalorder %s29_s27, %s610_s8  ;;  %p616_p13 = scmp.lt.s32.totalorder %s610_s8, %s610_s8 }
  0x1d   :  { %p617_p0 = por %p616_p13, %p615_p12 }
  0x1f   :  { %p618_p1 = pnand %p617_p0, %p611_p11 }
  0x21   :  { %621 = shalt.err (!%p618_p1)
}
  0x22   :  { %s654_s0 = smov 256   ;;  %s655_s9 = smov 16  }
  0x23   :  { %34 = dma.hbm_to_vmem [thread:$0]  %s792_s1, 2048, %s29_s27, [#allocation6], %s654_s0, %s654_s0, %s655_s9  }
  0x24   :  { %644 = dma.done.wait [#allocation3], 512  }
  0x25   :  { %645 = vsyncadd [#allocation3], 4294966784 }
  0x26   :  { %646 = dma.done.wait [#allocation6], 2048  }
  0x27   :  { %647 = vsyncadd [#allocation6], 4294965248  ;;  %v656_v0 = vmov 0   ;;  %v550_v1 = vld [vmem:[#allocation5 + $0x4] ss:$16 sps:$4 sm:$0xff]   ;;  %vm190_vm0 = vcmask 523264   ;;  %v70_v21 = vlaneseq }
  0x28   :  { %235 = vmatprep.mubr.bf16.mxu0 %v656_v0  ;;  %308 = vmatprep.mubr.bf16.mxu1 %v656_v0  ;;  %v552_v2 = vld [vmem:[#allocation5 + $0xc] ss:$16 sps:$4 sm:$0xff]   ;;  %v554_v3 = vld [vmem:[#allocation5] ss:$16 sps:$4 sm:$0xff]   ;;  %v555_v4 = vld [vmem:[#allocation5 + $0x8] ss:$16 sps:$4 sm:$0xff]  }
  0x29   :  { %203 = vmatprep.subr.bf16.mxu0 %v550_v1  ;;  %276 = vmatprep.subr.bf16.mxu1 %v552_v2  ;;  %v556_v5 = vld [vmem:[#allocation5 + $0x24] ss:$16 sps:$4 sm:$0xff]   ;;  %v558_v6 = vld [vmem:[#allocation5 + $0x2c] ss:$16 sps:$4 sm:$0xff]   ;;  %v560_v7 = vld [vmem:[#allocation5 + $0x20] ss:$16 sps:$4 sm:$0xff]  }
  0x2a   :  { %204 = vmatpush1.bf16.msra.mxu0 %v554_v3  ;;  %277 = vmatpush1.bf16.msra.mxu1 %v555_v4  ;;  %v561_v8 = vld [vmem:[#allocation5 + $0x28] ss:$16 sps:$4 sm:$0xff]   ;;  %v562_v9 = vld [vmem:[#allocation5 + $0x44] ss:$16 sps:$4 sm:$0xff]   ;;  %v564_v10 = vld [vmem:[#allocation5 + $0x4c] ss:$16 sps:$4 sm:$0xff]  }
  0x2b   :  { %205 = vmatprep.subr.bf16.mxu0 %v556_v5  ;;  %278 = vmatprep.subr.bf16.mxu1 %v558_v6  ;;  %v566_v11 = vld [vmem:[#allocation5 + $0x40] ss:$16 sps:$4 sm:$0xff]   ;;  %v567_v12 = vld [vmem:[#allocation5 + $0x48] ss:$16 sps:$4 sm:$0xff]   ;;  %v568_v13 = vld [vmem:[#allocation5 + $0x64] ss:$16 sps:$4 sm:$0xff]  }
  0x2c   :  { %v570_v14 = vld [vmem:[#allocation5 + $0x6c] ss:$16 sps:$4 sm:$0xff]   ;;  %v572_v15 = vld [vmem:[#allocation5 + $0x60] ss:$16 sps:$4 sm:$0xff]   ;;  %v573_v16 = vld [vmem:[#allocation5 + $0x68] ss:$16 sps:$4 sm:$0xff]  }
  0x2d   :  { %v574_v17 = vld [vmem:[#allocation2] sm:$0xff]   ;;  %v575_v18 = vld [vmem:[#allocation2 + $0x8] sm:$0xff]   ;;  %v576_v19 = vld [vmem:[#allocation2 + $0x10] sm:$0xff]   ;;  %v71_v22 = vshrl.u32 %v70_v21, 7  ;;  %vm446_vm1 = vcmask 1043456   ;;  %vm447_vm2 = vcmask 64516  }
  0x2e   :  { %206 = vmatpush1.bf16.msra.mxu0 %v560_v7  ;;  %279 = vmatpush1.bf16.msra.mxu1 %v561_v8  ;;  %v577_v20 = vld [vmem:[#allocation2 + $0x18] sm:$0xff]   ;;  %v68_v25 = vld [vmem:[%s793_s2] sm:$0xf]  ;;  %vm728_vm3 = vmor %vm447_vm2, %vm446_vm1  ;;  %s657_s2 = smov [#allocation7]  }
  0x2f   :  { %207 = vmatprep.subr.bf16.mxu0 %v562_v9  ;;  %280 = vmatprep.subr.bf16.mxu1 %v564_v10  ;;  %v72_v23 = vsub.s32 0, %v71_v22  ;;  %v80_v24 = vsub.s32 2, %v71_v22  ;;  %v76_v26 = vsub.s32 1, %v71_v22  ;;  %v84_v27 = vsub.s32 3, %v71_v22  ;;  %s469_s13 = sshll.u32 %s657_s2, 4  ;;  %s470_s13 = int_to_ptr.vmem [resolvable:$true] %s469_s13 }
  0x30   :  { %s622_s14 = scalar_lea.vmem %s470_s13, 2048  ;;  %p627_p3 = scmp.lt.s32.totalorder %s470_s13, %s470_s13 }
  0x31   :  { %v716_v28 = vrot.slane %v68_v25, %v72_v23  ;;  %v718_v29 = vrot.slane %v68_v25, %v80_v24  ;;  %v720_v30 = vrot.slane %v68_v25, %v76_v26  ;;  %v722_v31 = vrot.slane %v68_v25, %v84_v27  ;;  %p623_p2 = scmp.ne.s32.totalorder %s470_s13, %s622_s14  ;;  %p628_p4 = scmp.lt.s32.totalorder %s622_s14, %s622_s14 }
  0x32   :  { %208 = vmatpush1.bf16.msra.mxu0 %v566_v11  ;;  %281 = vmatpush1.bf16.msra.mxu1 %v567_v12 }
  0x33   :  { %209 = vmatprep.subr.bf16.mxu0 %v568_v13  ;;  %282 = vmatprep.subr.bf16.mxu1 %v570_v14  ;;  %p629_p5 = por %p628_p4, %p627_p3 }
  0x35   :  { %p630_p6 = pnand %p629_p5, %p623_p2 }
  0x36   :  { %210 = vmatpush1.bf16.msra.mxu0 %v572_v15  ;;  %283 = vmatpush1.bf16.msra.mxu1 %v573_v16 }
  0x39   :  { %502 = vmatmul.mubr.msk.bf16.vlgmr.msra.gmra.mrb[0].mxu0 %vm190_vm0, %v574_v17  ;;  %506 = vmatmul.mubr.msk.bf16.vlgmr.msra.gmra.mrb[0].mxu1 %vm190_vm0, %v574_v17 }
  0x3a   :  { %245 = vmatprep.mubr.bf16.mxu0 %v656_v0  ;;  %318 = vmatprep.mubr.bf16.mxu1 %v656_v0 }
  0x41   :  { %503 = vmatmul.mubr.msk.bf16.gmra.mrb[4].mxu0 %vm190_vm0, %v575_v18  ;;  %507 = vmatmul.mubr.msk.bf16.gmra.mrb[4].mxu1 %vm190_vm0, %v575_v18 }
  0x42   :  { %255 = vmatprep.mubr.bf16.mxu0 %v656_v0  ;;  %328 = vmatprep.mubr.bf16.mxu1 %v656_v0 }
  0x49   :  { %504 = vmatmul.mubr.msk.bf16.gmra.mrb[8].mxu0 %vm190_vm0, %v576_v19  ;;  %508 = vmatmul.mubr.msk.bf16.gmra.mrb[8].mxu1 %vm190_vm0, %v576_v19 }
  0x4a   :  { %265 = vmatprep.mubr.bf16.mxu0 %v656_v0  ;;  %338 = vmatprep.mubr.bf16.mxu1 %v656_v0 }
  0x51   :  { %505 = vmatmul.mubr.msk.bf16.gmra.mrb[12].mxu0 %vm190_vm0, %v577_v20  ;;  %509 = vmatmul.mubr.msk.bf16.gmra.mrb[12].mxu1 %vm190_vm0, %v577_v20 }
 0x10c   :  { %v237_v32 = vpop.f32.mrb[0].mxu0  ;;  %v310_v33 = vpop.f32.mrb[0].mxu1 }
 0x10d   :  { %v238_v34 = vadd.f32 %v237_v32, %v716_v28  ;;  %v311_v35 = vadd.f32 %v310_v33, %v718_v29  ;;  %v239_v36 = vpop.f32.mrb[1].mxu0  ;;  %v312_v37 = vpop.f32.mrb[1].mxu1 }
 0x10e   :  { %v240_v38 = vadd.f32 %v239_v36, %v720_v30  ;;  %v313_v39 = vadd.f32 %v312_v37, %v722_v31  ;;  %v241_v40 = vpop.f32.mrb[2].mxu0  ;;  %v314_v41 = vpop.f32.mrb[2].mxu1 }
 0x10f   :  { %v242_v43 = vadd.f32 %v241_v40, %v716_v28  ;;  %v315_v44 = vadd.f32 %v314_v41, %v718_v29  ;;  %v243_v45 = vpop.f32.mrb[3].mxu0  ;;  %v316_v46 = vpop.f32.mrb[3].mxu1 }
 0x110   :  { %v526_v47 = vpack.c.bf16 %v240_v38, %v238_v34  ;;  %v527_v48 = vpack.c.bf16 %v313_v39, %v311_v35  ;;  %v244_v49 = vadd.f32 %v243_v45, %v720_v30  ;;  %v317_v50 = vadd.f32 %v316_v46, %v722_v31 }
 0x112   :  { %445 = vst [vmem:[#allocation7] sm:$0xff] %v526_v47  ;;  %449 = vst.msk [vmem:[#allocation7 + $0x8] sm:$0xff] %vm728_vm3, %v527_v48  ;;  %v528_v51 = vpack.c.bf16 %v244_v49, %v242_v43  ;;  %v529_v52 = vpack.c.bf16 %v317_v50, %v315_v44 }
 0x114   :  { %450 = vst [vmem:[#allocation7 + $0x10] sm:$0xff] %v528_v51  ;;  %451 = vst.msk [vmem:[#allocation7 + $0x18] sm:$0xff] %vm728_vm3, %v529_v52  ;;  %v247_v53 = vpop.f32.mrb[4].mxu0  ;;  %v320_v54 = vpop.f32.mrb[4].mxu1 }
 0x115   :  { %v248_v55 = vadd.f32 %v247_v53, %v716_v28  ;;  %v321_v56 = vadd.f32 %v320_v54, %v718_v29  ;;  %v249_v57 = vpop.f32.mrb[5].mxu0  ;;  %v322_v58 = vpop.f32.mrb[5].mxu1 }
 0x116   :  { %v250_v59 = vadd.f32 %v249_v57, %v720_v30  ;;  %v323_v60 = vadd.f32 %v322_v58, %v722_v31  ;;  %v251_v61 = vpop.f32.mrb[6].mxu0  ;;  %v324_v62 = vpop.f32.mrb[6].mxu1 }
 0x117   :  { %v252_v63 = vadd.f32 %v251_v61, %v716_v28  ;;  %v325_v0 = vadd.f32 %v324_v62, %v718_v29  ;;  %v253_v1 = vpop.f32.mrb[7].mxu0  ;;  %v326_v2 = vpop.f32.mrb[7].mxu1 }
 0x118   :  { %v530_v3 = vpack.c.bf16 %v250_v59, %v248_v55  ;;  %v531_v4 = vpack.c.bf16 %v323_v60, %v321_v56  ;;  %v254_v5 = vadd.f32 %v253_v1, %v720_v30  ;;  %v327_v6 = vadd.f32 %v326_v2, %v722_v31 }
 0x11a   :  { %452 = vst [vmem:[#allocation7 + $0x20] sm:$0xff] %v530_v3  ;;  %453 = vst.msk [vmem:[#allocation7 + $0x28] sm:$0xff] %vm728_vm3, %v531_v4  ;;  %v532_v7 = vpack.c.bf16 %v254_v5, %v252_v63  ;;  %v533_v8 = vpack.c.bf16 %v327_v6, %v325_v0 }
 0x11c   :  { %454 = vst [vmem:[#allocation7 + $0x30] sm:$0xff] %v532_v7  ;;  %455 = vst.msk [vmem:[#allocation7 + $0x38] sm:$0xff] %vm728_vm3, %v533_v8  ;;  %v257_v9 = vpop.f32.mrb[8].mxu0  ;;  %v330_v10 = vpop.f32.mrb[8].mxu1 }
 0x11d   :  { %v258_v11 = vadd.f32 %v257_v9, %v716_v28  ;;  %v331_v12 = vadd.f32 %v330_v10, %v718_v29  ;;  %v259_v13 = vpop.f32.mrb[9].mxu0  ;;  %v332_v14 = vpop.f32.mrb[9].mxu1 }
 0x11e   :  { %v260_v15 = vadd.f32 %v259_v13, %v720_v30  ;;  %v333_v16 = vadd.f32 %v332_v14, %v722_v31  ;;  %v261_v17 = vpop.f32.mrb[10].mxu0  ;;  %v334_v18 = vpop.f32.mrb[10].mxu1 }
 0x11f   :  { %v262_v19 = vadd.f32 %v261_v17, %v716_v28  ;;  %v335_v20 = vadd.f32 %v334_v18, %v718_v29  ;;  %v263_v21 = vpop.f32.mrb[11].mxu0  ;;  %v336_v22 = vpop.f32.mrb[11].mxu1 }
 0x120   :  { %v534_v23 = vpack.c.bf16 %v260_v15, %v258_v11  ;;  %v535_v24 = vpack.c.bf16 %v333_v16, %v331_v12  ;;  %v264_v25 = vadd.f32 %v263_v21, %v720_v30  ;;  %v337_v26 = vadd.f32 %v336_v22, %v722_v31 }
 0x122   :  { %456 = vst [vmem:[#allocation7 + $0x40] sm:$0xff] %v534_v23  ;;  %457 = vst.msk [vmem:[#allocation7 + $0x48] sm:$0xff] %vm728_vm3, %v535_v24  ;;  %v536_v27 = vpack.c.bf16 %v264_v25, %v262_v19  ;;  %v537_v32 = vpack.c.bf16 %v337_v26, %v335_v20 }
 0x124   :  { %458 = vst [vmem:[#allocation7 + $0x50] sm:$0xff] %v536_v27  ;;  %459 = vst.msk [vmem:[#allocation7 + $0x58] sm:$0xff] %vm728_vm3, %v537_v32  ;;  %v267_v33 = vpop.f32.mrb[12].mxu0  ;;  %v340_v34 = vpop.f32.mrb[12].mxu1 }
 0x125   :  { %v268_v35 = vadd.f32 %v267_v33, %v716_v28  ;;  %v341_v36 = vadd.f32 %v340_v34, %v718_v29  ;;  %v269_v37 = vpop.f32.mrb[13].mxu0  ;;  %v342_v38 = vpop.f32.mrb[13].mxu1 }
 0x126   :  { %v270_v39 = vadd.f32 %v269_v37, %v720_v30  ;;  %v343_v40 = vadd.f32 %v342_v38, %v722_v31  ;;  %v271_v41 = vpop.f32.mrb[14].mxu0  ;;  %v344_v43 = vpop.f32.mrb[14].mxu1 }
 0x127   :  { %v272_v44 = vadd.f32 %v271_v41, %v716_v28  ;;  %v345_v45 = vadd.f32 %v344_v43, %v718_v29  ;;  %v273_v46 = vpop.f32.mrb[15].mxu0  ;;  %v346_v47 = vpop.f32.mrb[15].mxu1 }
 0x128   :  { %v538_v48 = vpack.c.bf16 %v270_v39, %v268_v35  ;;  %v539_v49 = vpack.c.bf16 %v343_v40, %v341_v36  ;;  %v274_v50 = vadd.f32 %v273_v46, %v720_v30  ;;  %v347_v51 = vadd.f32 %v346_v47, %v722_v31 }
 0x12a   :  { %460 = vst [vmem:[#allocation7 + $0x60] sm:$0xff] %v538_v48  ;;  %461 = vst.msk [vmem:[#allocation7 + $0x68] sm:$0xff] %vm728_vm3, %v539_v49  ;;  %v540_v52 = vpack.c.bf16 %v274_v50, %v272_v44  ;;  %v541_v53 = vpack.c.bf16 %v347_v51, %v345_v45 }
 0x12c   :  { %462 = vst [vmem:[#allocation7 + $0x70] sm:$0xff] %v540_v52  ;;  %463 = vst.msk [vmem:[#allocation7 + $0x78] sm:$0xff] %vm728_vm3, %v541_v53 }
 0x12d   :  { %633 = shalt.err (!%p630_p6)
}
 0x12e   :  { %s634_s17 = scalar_lea.hbm %s794_s3, 2048 }
 0x12f   :  { %p635_p7 = scmp.ne.s32.totalorder %s794_s3, %s634_s17  ;;  %p638_p8 = scmp.lt.u32.totalorder %s634_s17, %s794_s3 }
 0x131   :  { %p640_p9 = pnand %p638_p8, %p635_p7 }
 0x133   :  { %643 = shalt.err (!%p640_p9)
}
 0x134   :  { %475 = dma.vmem_to_hbm [thread:$0]  %s470_s13, 2048, %s794_s3, [#allocation4], %s654_s0, %s654_s0, %s655_s9  }
 0x135   :  { %648 = dma.done.wait [#allocation4], 2048  }
 0x136   :  { %649 = vsyncadd [#allocation4], 4294965248 }
 0x137   :  { %479 = vsyncpa [#allocation3], 1 }
 0x138   :  { %480 = vsyncpa [#allocation6], 1 }
 0x139   :  { %481 = vsyncpa [#allocation4], 1 }

</bundles_post_ra>
